<compile_context>
chip_gen: v7x
topology: tpu7x:2x2x1
jax: 0.10.0
libtpu: 0.0.40
codegen_flags: <defaults>
</compile_context>

<pallas_src>
import jax
import jax.numpy as jnp
from jax.experimental import pallas as pl
from jax.experimental.pallas import tpu as pltpu


_VMEM_LIMIT = 64 * 1024 * 1024          # <= physical VMEM on every generation
_SINGLE_PASS_BUDGET = 28 * 1024 * 1024  # working-set budget for the no-K-grid path


def _round_up(x, m):
    return (x + m - 1) // m * m


def _pick_tile(dim, cap, align):
    """Largest tile <= cap (multiple of `align`) with zero or minimal padding."""
    dim_a = _round_up(dim, align)
    if dim_a <= cap:
        return dim_a                      # one block covers the whole dim
    cap_a = cap - cap % align
    best = align
    for t in range(cap_a, align - 1, -align):
        if dim_a % t == 0:                # divisor -> zero padding waste
            best = t
            break
    if best >= cap_a // 2:
        return best
    return cap_a                          # accept < one tile of padding instead


# ---------------------------------------------------------------------------
# Kernels
# ---------------------------------------------------------------------------
def _fc_kernel_single(x_ref, w_ref, b_ref, o_ref):
    # Whole-K reduction in one step: no accumulator scratch, no K grid axis.
    h = jnp.dot(x_ref[...], w_ref[...], preferred_element_type=jnp.float32)
    h = h + b_ref[...]                    # bias broadcast over batch (f32)
    o_ref[...] = jnp.maximum(h, 0.0).astype(o_ref.dtype)   # ReLU


def _fc_kernel_ktiled_f32(x_ref, w_ref, b_ref, o_ref):
    # f32 output: accumulate directly into the resident output tile (no scratch).
    k = pl.program_id(2)

    @pl.when(k == 0)
    def _init():
        o_ref[...] = jnp.broadcast_to(b_ref[...], o_ref.shape)

    o_ref[...] += jnp.dot(x_ref[...], w_ref[...],
                          preferred_element_type=jnp.float32)

    @pl.when(k == pl.num_programs(2) - 1)
    def _finalize():
        o_ref[...] = jnp.maximum(o_ref[...], 0.0)          # ReLU


def _fc_kernel_ktiled_acc(x_ref, w_ref, b_ref, o_ref, acc_ref):
    # Non-f32 output: f32 accumulator scratch, single cast in the epilogue.
    k = pl.program_id(2)

    @pl.when(k == 0)
    def _init():
        acc_ref[...] = jnp.broadcast_to(b_ref[...], acc_ref.shape)

    acc_ref[...] += jnp.dot(x_ref[...], w_ref[...],
                            preferred_element_type=jnp.float32)

    @pl.when(k == pl.num_programs(2) - 1)
    def _finalize():
        o_ref[...] = jnp.maximum(acc_ref[...], 0.0).astype(o_ref.dtype)


# ---------------------------------------------------------------------------
# Wrapper
# ---------------------------------------------------------------------------
def fc_layer(x, w_t, b, *, tile_cap_mn=512, tile_cap_k=1024, _force_tk=None):
    """x: (B, in_size), w_t: (in_size, out_size), b: (out_size,)."""
    B, K = x.shape
    Kw, N = w_t.shape
    assert K == Kw and b.shape == (N,)

    out_dtype = x.dtype
    out_bytes = jnp.dtype(out_dtype).itemsize

    # bf16 operands on the MXU, f32 accumulation (deliberate precision trade
    # vs. PyTorch's f32 Linear).  Casts are skipped when already bf16.
    x_lo = x if x.dtype == jnp.bfloat16 else x.astype(jnp.bfloat16)
    w_lo = w_t if w_t.dtype == jnp.bfloat16 else w_t.astype(jnp.bfloat16)
    b_f32 = b.astype(jnp.float32)

    tm = _pick_tile(B, tile_cap_mn, 16)     # bf16 sublane packing -> 16-aligned
    tn = _pick_tile(N, tile_cap_mn, 128)    # lane-dense, unmasked output stores
    Mp = _round_up(_round_up(B, 16), tm)
    Np = _round_up(_round_up(N, 128), tn)
    Kp128 = _round_up(K, 128)

    # Single-pass K (no reduction grid axis) when the per-step working set fits
    # the VMEM budget on every generation (v7x has only 64 MiB physical).
    vmem_single = (2 * (tm * Kp128 + Kp128 * tn) * 2   # double-buffered bf16 inputs
                   + 2 * tm * tn * out_bytes           # double-buffered output
                   + 2 * tn * 4)                       # bias
    single_pass = (_force_tk is None) and (vmem_single <= _SINGLE_PASS_BUDGET)

    if single_pass:
        tk = Kp128
    else:
        tk = _force_tk if _force_tk is not None else _pick_tile(K, tile_cap_k, 128)
    Kp = _round_up(Kp128, tk)

    # Zero padding is numerically exact: padded K contributes 0 to the sum,
    # padded M/N rows/cols are sliced away below.  Pads are skipped entirely
    # when shapes are already tile-aligned (common case -> no extra HBM pass).
    if (Mp, Kp) != (B, K):
        x_lo = jnp.pad(x_lo, ((0, Mp - B), (0, Kp - K)))
    if (Kp, Np) != (K, N):
        w_lo = jnp.pad(w_lo, ((0, Kp - K), (0, Np - N)))
    b2d = (b_f32 if Np == N else jnp.pad(b_f32, (0, Np - N))).reshape(1, Np)

    grid_m, grid_n, grid_k = Mp // tm, Np // tn, Kp // tk
    flops = 2 * Mp * Kp * Np
    out_hbm = Mp * Np * out_bytes

    if single_pass:
        # x streams once (its block index is constant along the inner N axis);
        # W streams once per M tile; output written once.
        bytes_accessed = Mp * Kp * 2 + grid_m * Kp * Np * 2 + Np * 4 + out_hbm
        out_padded = pl.pallas_call(
            _fc_kernel_single,
            out_shape=jax.ShapeDtypeStruct((Mp, Np), out_dtype),
            grid_spec=pltpu.PrefetchScalarGridSpec(
                num_scalar_prefetch=0,
                grid=(grid_m, grid_n),
                in_specs=[
                    pl.BlockSpec((tm, Kp), lambda i, j: (i, 0)),   # x slab
                    pl.BlockSpec((Kp, tn), lambda i, j: (0, j)),   # W_t slab
                    pl.BlockSpec((1, tn), lambda i, j: (0, j)),    # bias tile
                ],
                out_specs=pl.BlockSpec((tm, tn), lambda i, j: (i, j)),
            ),
            compiler_params=pltpu.CompilerParams(
                dimension_semantics=("parallel", "parallel"),
                vmem_limit_bytes=_VMEM_LIMIT,
            ),
            cost_estimate=pl.CostEstimate(
                flops=flops, transcendentals=0, bytes_accessed=bytes_accessed),
        )(x_lo, w_lo, b2d)
    else:
        # K-tiled reduction: x re-read once per N tile, W once per M tile.
        bytes_accessed = (grid_n * Mp * Kp * 2 + grid_m * Kp * Np * 2
                          + Np * 4 + out_hbm)
        if out_dtype == jnp.float32:
            kernel = _fc_kernel_ktiled_f32
            scratch = []
        else:
            kernel = _fc_kernel_ktiled_acc
            scratch = [pltpu.VMEM((tm, tn), jnp.float32)]
        out_padded = pl.pallas_call(
            kernel,
            out_shape=jax.ShapeDtypeStruct((Mp, Np), out_dtype),
            grid_spec=pltpu.PrefetchScalarGridSpec(
                num_scalar_prefetch=0,
                grid=(grid_m, grid_n, grid_k),
                in_specs=[
                    pl.BlockSpec((tm, tk), lambda i, j, k: (i, k)),   # x tile
                    pl.BlockSpec((tk, tn), lambda i, j, k: (k, j)),   # W_t tile
                    pl.BlockSpec((1, tn), lambda i, j, k: (0, j)),    # bias tile
                ],
                out_specs=pl.BlockSpec((tm, tn), lambda i, j, k: (i, j)),
                scratch_shapes=scratch,
            ),
            compiler_params=pltpu.CompilerParams(
                dimension_semantics=("parallel", "parallel", "arbitrary"),
                vmem_limit_bytes=_VMEM_LIMIT,
            ),
            cost_estimate=pl.CostEstimate(
                flops=flops, transcendentals=0, bytes_accessed=bytes_accessed),
        )(x_lo, w_lo, b2d)

    if (Mp, Np) == (B, N):
        return out_padded
    return out_padded[:B, :N]


# ---------------------------------------------------------------------------
# Reference + tests
# ---------------------------------------------------------------------------
def reference(x, w_t, b):
    # Same numerics as the kernel: bf16 operands, f32 accumulate, bias, ReLU.
    h = jnp.dot(x.astype(jnp.bfloat16), w_t.astype(jnp.bfloat16),
                preferred_element_type=jnp.float32)
    h = h + b[None, :].astype(jnp.float32)
    return jnp.maximum(h, 0.0).astype(x.dtype)


def _run_case(batch, in_size, out_size, key, dtype=jnp.float32, force_tk=None):
    kx, kw, kb = jax.random.split(key, 3)
    # torch.nn.Linear default init: U(-sqrt(1/in_size), sqrt(1/in_size))
    bound = (1.0 / in_size) ** 0.5
    w = jax.random.uniform(kw, (out_size, in_size), jnp.float32, -bound, bound)
    b = jax.random.uniform(kb, (out_size,), jnp.float32, -bound, bound)
    w_t = w.T.astype(dtype)                       # (in_size, out_size)
    x = jax.random.normal(kx, (batch, in_size), jnp.float32).astype(dtype)

    out = jax.block_until_ready(fc_layer(x, w_t, b, _force_tk=force_tk))
    ref = reference(x, w_t, b)
    assert out.shape == (batch, out_size)
    o32, r32 = out.astype(jnp.float32), ref.astype(jnp.float32)
    err = float(jnp.max(jnp.abs(o32 - r32)))
    assert jnp.allclose(o32, r32, atol=2e-2, rtol=2e-2), f"max abs err = {err}"


if __name__ == "__main__":
    key = jax.random.PRNGKey(0)
    k1, k2, k3, k4 = jax.random.split(key, 4)

    # Module-scale small shape (B=8, in=32, out=32): single-pass path.
    _run_case(8, 32, 32, k1)
    # Larger shape (single-pass, whole problem in one grid step, tn=384 so no
    # padded-N waste).
    _run_case(256, 512, 384, k2)
    # Force the K-tiled path (f32 output -> accumulate directly into o_ref).
    _run_case(64, 384, 256, k3, force_tk=128)
    # Force the K-tiled path with bf16 output -> f32 scratch accumulator.
    _run_case(32, 256, 128, k4, dtype=jnp.bfloat16, force_tk=128)

    print("KERNEL_OK")
</pallas_src>

<mosaic_0001>
module attributes {stable_mosaic.version = 11 : i64} {
  func.func @_fc_kernel_single(%arg0: i32, %arg1: i32, %arg2: memref<16x128xbf16, #tpu.memory_space<vmem>>, %arg3: memref<128x128xbf16, #tpu.memory_space<vmem>>, %arg4: memref<1x128xf32, #tpu.memory_space<vmem>>, %arg5: memref<16x128xf32, #tpu.memory_space<vmem>>) attributes {dimension_semantics = [#tpu.dimension_semantics<parallel>, #tpu.dimension_semantics<parallel>], iteration_bounds = array<i64: 1, 1>, scalar_prefetch = 0 : i64, scratch_operands = 0 : i64, tpu.core_type = #tpu.core_type<tc>, window_params = [{transform_indices = @transform_0, window_bounds = array<i64: 16, 128>}, {transform_indices = @transform_1, window_bounds = array<i64: 128, 128>}, {transform_indices = @transform_2, window_bounds = array<i64: 1, 128>}, {transform_indices = @transform_3, window_bounds = array<i64: 16, 128>}]} {
    %c0 = arith.constant 0 : index
    %c0_0 = arith.constant 0 : index
    %0 = vector.load %arg2[%c0, %c0_0] : memref<16x128xbf16, #tpu.memory_space<vmem>>, vector<16x128xbf16>
    %c0_1 = arith.constant 0 : index
    %c0_2 = arith.constant 0 : index
    %1 = vector.load %arg3[%c0_1, %c0_2] : memref<128x128xbf16, #tpu.memory_space<vmem>>, vector<128x128xbf16>
    %cst = arith.constant dense<0.000000e+00> : vector<16x128xf32>
    %2 = tpu.matmul %0, %1, %cst {dimension_numbers = #tpu.dot_dimension_numbers<[1], [0], [0], [1], [0, 0, 1, 1], [], []>} : vector<16x128xbf16>, vector<128x128xbf16>, vector<16x128xf32> -> vector<16x128xf32>
    %c0_3 = arith.constant 0 : index
    %c0_4 = arith.constant 0 : index
    %3 = vector.load %arg4[%c0_3, %c0_4] : memref<1x128xf32, #tpu.memory_space<vmem>>, vector<1x128xf32>
    %4 = vector.broadcast %3 : vector<1x128xf32> to vector<16x128xf32>
    %5 = arith.addf %2, %4 : vector<16x128xf32>
    %cst_5 = arith.constant 0.000000e+00 : f32
    %6 = vector.broadcast %cst_5 : f32 to vector<16x128xf32>
    %7 = arith.maximumf %5, %6 : vector<16x128xf32>
    %c0_6 = arith.constant 0 : index
    %c0_7 = arith.constant 0 : index
    %8 = vector.load %arg5[%c0_6, %c0_7] : memref<16x128xf32, #tpu.memory_space<vmem>>, vector<16x128xf32>
    tpu.vector_store %arg5[%c0_6, %c0_7], %7 {strides = array<i32>} : memref<16x128xf32, #tpu.memory_space<vmem>>, vector<16x128xf32>,
    return
  }
  func.func @transform_0(%arg0: i32, %arg1: i32) -> (i32, i32) {
    %c0_i32 = arith.constant 0 : i32
    %c0_i32_0 = arith.constant 0 : i32
    return %arg0, %c0_i32 : i32, i32
  }
  func.func @transform_1(%arg0: i32, %arg1: i32) -> (i32, i32) {
    %c0_i32 = arith.constant 0 : i32
    %c0_i32_0 = arith.constant 0 : i32
    return %c0_i32, %arg1 : i32, i32
  }
  func.func @transform_2(%arg0: i32, %arg1: i32) -> (i32, i32) {
    %c0_i32 = arith.constant 0 : i32
    %c0_i32_0 = arith.constant 0 : i32
    return %c0_i32, %arg1 : i32, i32
  }
  func.func @transform_3(%arg0: i32, %arg1: i32) -> (i32, i32) {
    %c0_i32 = arith.constant 0 : i32
    return %arg0, %arg1 : i32, i32
  }
}

</mosaic_0001>

<bundles_post_ra>
// kernel: tpu_custom_call.1
= control target key start
LH: loop header
LB: loop body
LE: loop exit
PB: predicated region body
PF: predicated region fallthrough
CT: control target
= control target key end

     0   :  { %8 = vsyncpa [#allocation3], 0  ;;  %s434_s0 = inlined_call_operand.hbm [shape: bf16[16,128], index: 0, kind: input, shape index: {}]   ;;  %s435_s1 = inlined_call_operand.hbm [shape: bf16[128,128], index: 1, kind: input, shape index: {}]   ;;  %s436_s2 = inlined_call_operand.hbm [shape: f32[1,128], index: 2, kind: input, shape index: {}]   ;;  %s437_s3 = inlined_call_operand.hbm [shape: f32[16,128], index: 3, kind: output, shape index: {}]  }
   0x1   :  { %9 = vsyncpa [#allocation6], 0 }
   0x2   :  { %10 = vsyncpa [#allocation4], 0  ;;  %s349_s12 = smov [#allocation5]   ;;  %s350_s14 = smov [#allocation2]  }
   0x3   :  { %s28_s13 = sshll.u32 %s349_s12, 4  ;;  %s16_s15 = sshll.u32 %s350_s14, 4  ;;  %s29_s13 = int_to_ptr.vmem [resolvable:$true] %s28_s13  ;;  %s379_s15 = int_to_ptr.vmem [resolvable:$true] %s16_s15 }
   0x4   :  { %s255_s18 = scalar_lea.hbm %s435_s1, 1024 }
   0x5   :  { %p256_p0 = scmp.ne.s32.totalorder %s435_s1, %s255_s18  ;;  %p259_p1 = scmp.lt.u32.totalorder %s255_s18, %s435_s1 }
   0x7   :  { %p261_p2 = pnand %p259_p1, %p256_p0 }
   0x9   :  { %264 = shalt.err (!%p261_p2)
}
   0xa   :  { %s265_s23 = scalar_lea.vmem %s29_s13, 1024  ;;  %p270_p4 = scmp.lt.s32.totalorder %s29_s13, %s29_s13 }
   0xb   :  { %p266_p3 = scmp.ne.s32.totalorder %s29_s13, %s265_s23  ;;  %p271_p5 = scmp.lt.s32.totalorder %s265_s23, %s265_s23 }
   0xd   :  { %p272_p6 = por %p271_p5, %p270_p4 }
   0xf   :  { %p273_p7 = pnand %p272_p6, %p266_p3 }
  0x11   :  { %276 = shalt.err (!%p273_p7)
}
  0x12   :  { %s351_s24 = smov 64   ;;  %s352_s25 = smov 4  }
  0x13   :  { %34 = dma.hbm_to_vmem [thread:$0]  %s435_s1, 1024, %s29_s13, [#allocation6], %s351_s24, %s351_s24, %s352_s25  }
  0x14   :  { %s277_s30 = scalar_lea.hbm %s434_s0, 128 }
  0x15   :  { %p278_p8 = scmp.ne.s32.totalorder %s434_s0, %s277_s30  ;;  %p281_p9 = scmp.lt.u32.totalorder %s277_s30, %s434_s0 }
  0x17   :  { %p283_p10 = pnand %p281_p9, %p278_p8 }
  0x19   :  { %286 = shalt.err (!%p283_p10)
}
  0x1a   :  { %s287_s8 = scalar_lea.vmem %s379_s15, 128  ;;  %p292_p12 = scmp.lt.s32.totalorder %s379_s15, %s379_s15 }
  0x1b   :  { %p288_p11 = scmp.ne.s32.totalorder %s379_s15, %s287_s8  ;;  %p293_p13 = scmp.lt.s32.totalorder %s287_s8, %s287_s8 }
  0x1d   :  { %p294_p0 = por %p293_p13, %p292_p12 }
  0x1f   :  { %p295_p1 = pnand %p294_p0, %p288_p11 }
  0x21   :  { %298 = shalt.err (!%p295_p1)
}
  0x22   :  { %22 = dma.hbm_to_vmem [thread:$0]  %s434_s0, 128, %s379_s15, [#allocation3], %s351_s24, %s351_s24, %s352_s25  }
  0x23   :  { %s353_s10 = smov [#allocation7]   ;;  %s299_s14 = scalar_lea.hbm %s436_s2, 16 }
  0x24   :  { %s41_s11 = sshll.u32 %s353_s10, 4  ;;  %p300_p2 = scmp.ne.s32.totalorder %s436_s2, %s299_s14  ;;  %s42_s11 = int_to_ptr.vmem [resolvable:$true] %s41_s11 }
  0x25   :  { %p303_p3 = scmp.lt.u32.totalorder %s299_s14, %s436_s2 }
  0x27   :  { %p305_p4 = pnand %p303_p3, %p300_p2 }
  0x29   :  { %308 = shalt.err (!%p305_p4)
}
  0x2a   :  { %s309_s20 = scalar_lea.vmem %s42_s11, 16  ;;  %s313_s0 = scalar_lea.vmem %s42_s11, 32 }
  0x2b   :  { %p310_p5 = scmp.ne.s32.totalorder %s42_s11, %s309_s20  ;;  %p314_p6 = scmp.lt.s32.totalorder %s42_s11, %s42_s11 }
  0x2c   :  { %p315_p7 = scmp.lt.s32.totalorder %s313_s0, %s309_s20 }
  0x2e   :  { %p316_p8 = por %p315_p7, %p314_p6 }
  0x30   :  { %p317_p9 = pnand %p316_p8, %p310_p5 }
  0x32   :  { %320 = shalt.err (!%p317_p9)
}
  0x33   :  { %44 = dma.hbm_to_vmem [thread:$0]  %s436_s2, 16, %s42_s11, [#allocation6]  }
  0x34   :  { %343 = dma.done.wait [#allocation3], 128  }
  0x35   :  { %344 = vsyncadd [#allocation3], 4294967168 }
  0x36   :  { %345 = dma.done.wait [#allocation6], 1040  }
  0x37   :  { %346 = vsyncadd [#allocation6], 4294966256  ;;  %v354_v0 = vmov 0.0   ;;  %vm355_vm0 = vmmov 0   ;;  %v246_v1 = vld [vmem:[#allocation5] sm:$0xff]   ;;  %v247_v2 = vld [vmem:[#allocation5 + $0x8] sm:$0xff]  }
  0x38   :  { %216 = vmatprep.subr.bf16.mxu0 %v354_v0  ;;  %232 = vmatprep.mubr.msk.bf16.mxu0 %vm355_vm0, %v354_v0  ;;  %v248_v3 = vld [vmem:[#allocation5 + $0x10] sm:$0xff]   ;;  %v249_v4 = vld [vmem:[#allocation5 + $0x18] sm:$0xff]   ;;  %v250_v5 = vld [vmem:[#allocation5 + $0x20] sm:$0xff]   ;;  %s356_s2 = smov [#allocation8]  }
  0x39   :  { %217 = vmatpush3.bf16.msra.mxu0 %v246_v1  ;;  %v251_v6 = vld [vmem:[#allocation5 + $0x28] sm:$0xff]   ;;  %v252_v7 = vld [vmem:[#allocation5 + $0x30] sm:$0xff]   ;;  %v253_v8 = vld [vmem:[#allocation5 + $0x38] sm:$0xff]   ;;  %s184_s22 = sshll.u32 %s356_s2, 4  ;;  %s185_s22 = int_to_ptr.vmem [resolvable:$true] %s184_s22 }
  0x3a   :  { %218 = vmatprep.subr.bf16.mxu0 %v354_v0  ;;  %v254_v9 = vld [vmem:[#allocation2] sm:$0xff]   ;;  %v197_v10 = vld [vmem:[#allocation7] ss:$0 sm:$0xff]  ;;  %s321_s23 = scalar_lea.vmem %s185_s22, 256  ;;  %p326_p11 = scmp.lt.s32.totalorder %s185_s22, %s185_s22 }
  0x3b   :  { %p322_p10 = scmp.ne.s32.totalorder %s185_s22, %s321_s23  ;;  %p327_p12 = scmp.lt.s32.totalorder %s321_s23, %s321_s23 }
  0x3d   :  { %219 = vmatpush3.bf16.msra.mxu0 %v247_v2  ;;  %p328_p13 = por %p327_p12, %p326_p11 }
  0x3e   :  { %220 = vmatprep.subr.bf16.mxu0 %v354_v0 }
  0x3f   :  { %p329_p0 = pnand %p328_p13, %p322_p10 }
  0x41   :  { %221 = vmatpush3.bf16.msra.mxu0 %v248_v3 }
  0x42   :  { %222 = vmatprep.subr.bf16.mxu0 %v354_v0 }
  0x45   :  { %223 = vmatpush3.bf16.msra.mxu0 %v249_v4 }
  0x46   :  { %224 = vmatprep.subr.bf16.mxu0 %v354_v0 }
  0x49   :  { %225 = vmatpush3.bf16.msra.mxu0 %v250_v5 }
  0x4a   :  { %226 = vmatprep.subr.bf16.mxu0 %v354_v0 }
  0x4d   :  { %227 = vmatpush3.bf16.msra.mxu0 %v251_v6 }
  0x4e   :  { %228 = vmatprep.subr.bf16.mxu0 %v354_v0 }
  0x51   :  { %229 = vmatpush3.bf16.msra.mxu0 %v252_v7 }
  0x52   :  { %230 = vmatprep.subr.bf16.mxu0 %v354_v0 }
  0x55   :  { %231 = vmatpush3.bf16.msra.mxu0 %v253_v8 }
  0x58   :  { %233 = vmatmul.mubr.bf16.vlgmr.msra.gmra.mrb[0].mxu0 %v254_v9 }
 0x12b   :  { %v168_v11 = vpop.f32.mrb[0].mxu0 }
 0x12c   :  { %v169_v12 = vadd.f32 %v197_v10, %v168_v11  ;;  %v234_v13 = vpop.f32.mrb[1].mxu0 }
 0x12d   :  { %v171_v14 = vpop.f32.mrb[2].mxu0 }
 0x12e   :  { %v175_v15 = vmax.f32 %v169_v12, 0.0  ;;  %v172_v16 = vadd.f32 %v197_v10, %v171_v14  ;;  %v235_v17 = vpop.f32.mrb[3].mxu0 }
 0x130   :  { %177 = vst [vmem:[#allocation8] sm:$0xff] %v175_v15  ;;  %v176_v18 = vmax.f32 %v172_v16, 0.0 }
 0x132   :  { %178 = vst [vmem:[#allocation8 + $0x8] sm:$0xff] %v176_v18 }
 0x133   :  { %332 = shalt.err (!%p329_p0)
}
 0x134   :  { %s333_s26 = scalar_lea.hbm %s437_s3, 256 }
 0x135   :  { %p334_p1 = scmp.ne.s32.totalorder %s437_s3, %s333_s26  ;;  %p337_p2 = scmp.lt.u32.totalorder %s333_s26, %s437_s3 }
 0x137   :  { %p339_p3 = pnand %p337_p2, %p334_p1 }
 0x139   :  { %342 = shalt.err (!%p339_p3)
}
 0x13a   :  { %s357_s4 = smov 128   ;;  %s358_s5 = smov 8  }
 0x13b   :  { %190 = dma.vmem_to_hbm [thread:$0]  %s185_s22, 256, %s437_s3, [#allocation4], %s357_s4, %s357_s4, %s358_s5  }
 0x13c   :  { %347 = dma.done.wait [#allocation4], 256  }
 0x13d   :  { %348 = vsyncadd [#allocation4], 4294967040 }
 0x13e   :  { %194 = vsyncpa [#allocation3], 1 }
 0x13f   :  { %195 = vsyncpa [#allocation6], 1 }
 0x140   :  { %196 = vsyncpa [#allocation4], 1 }

</bundles_post_ra>
